<compile_context>
chip_gen: v5e
topology: v5e:2x2
jax: 0.10.0
libtpu: 0.0.40
codegen_flags: <defaults>
</compile_context>

<pallas_src>
import functools

import jax
import jax.numpy as jnp
from jax.experimental import pallas as pl
from jax.experimental.pallas import tpu as pltpu


def _round_up(x, m):
    return -(-x // m) * m


# -------------------------- recurrent Pallas kernel --------------------------
def rhn_recurrence_kernel(wx_ref, r_ref, rb_ref, h_out_ref, h_ref, *, TT, L):
    """One grid step = TT time steps x L highway ticks for one batch tile.

    wx_ref : (TT, TB, 3H) f32   hoisted input projection W.x + Wb (tick 0 only)
    r_ref  : (L, H, 3H)   bf16  fused per-tick recurrent weights, [hl | tl | cl]
    rb_ref : (L, 1, 3H)   f32   fused per-tick recurrent biases
    h_out  : (TT, L, TB, H) bf16  hidden state after every tick
    h_ref  : (TB, H) f32  VMEM scratch carrying the hidden state across time

    Grid = (batch tiles ["parallel"], time blocks ["arbitrary"]). The carry is
    valid because the time axis is the innermost sequential axis; the scratch
    is reset whenever a new batch tile starts (time block 0).
    """
    @pl.when(pl.program_id(1) == 0)
    def _():
        h_ref[...] = jnp.zeros_like(h_ref)          # init_state per batch tile

    H = h_ref.shape[-1]
    h = h_ref[...]                                   # (TB, H) f32

    # TT and L are small and static -> fully unrolled; R stays VMEM-resident.
    # TODO(synk): for L > ~4 use lax.fori_loop(..., unroll=True) over ticks.
    for tt in range(TT):
        wx = wx_ref[tt]                              # (TB, 3H) f32
        for tick in range(L):
            # bf16 x bf16 MXU matmul, f32 accumulation.
            gates = jnp.dot(h.astype(jnp.bfloat16), r_ref[tick],
                            preferred_element_type=jnp.float32)
            gates = gates + rb_ref[tick]             # f32 elementwise (v5e-safe)
            if tick == 0:                            # static branch, no runtime mask
                gates = gates + wx
            hl = gates[:, 0 * H:1 * H]
            tl = gates[:, 1 * H:2 * H]
            cl = gates[:, 2 * H:3 * H]
            h = hl * tl + h * cl                     # f32 gate math
            h_out_ref[tt, tick] = h.astype(h_out_ref.dtype)

    h_ref[...] = h


# ----------------------- output projection Pallas kernel ---------------------
def out_projection_kernel(h_ref, wo_ref, bo_ref, o_ref):
    # h bf16 (TR, H), Wo bf16 (H, TV), bo f32 (1, TV) -> o f32 (TR, TV)
    o_ref[...] = (jnp.dot(h_ref[...], wo_ref[...],
                          preferred_element_type=jnp.float32) + bo_ref[...])


# ------------------------- one-time parameter packing ------------------------
def pack_params(params):
    """Pack / reorder / cast weights ONCE, outside the per-call path.

    Fused gate column layout is [hl | tl | cl] == parameter indices
    [0 (H), 2 (C), 1 (T)] -- the PyTorch block uses W_C/R_C for tl and
    W_T/R_T for cl.
    """
    gate_order = (0, 2, 1)
    W_cat = jnp.concatenate([params["W"][g] for g in gate_order], axis=-1)     # (I, 3H)
    Wb_cat = jnp.concatenate([params["Wb"][g] for g in gate_order], axis=-1)   # (3H,)
    R_cat = jnp.concatenate([params["R"][:, g] for g in gate_order], axis=-1)  # (L, H, 3H)
    Rb_cat = jnp.concatenate([params["Rb"][:, g] for g in gate_order],
                             axis=-1)[:, None, :]                              # (L, 1, 3H)

    # Pad vocab once so the projection's vocab tile is lane-dense.
    V = params["Wo"].shape[-1]
    TV = 512 if V >= 512 else V
    V_pad = _round_up(V, TV)
    Wo, bo = params["Wo"], params["bo"]
    if V_pad != V:
        Wo = jnp.pad(Wo, ((0, 0), (0, V_pad - V)))
        bo = jnp.pad(bo, ((0, 0), (0, V_pad - V)))

    return {
        "embedding": params["embedding"],             # f32 lookup table
        "W_cat": W_cat.astype(jnp.bfloat16),          # bf16 MXU operands
        "Wb_cat": Wb_cat.astype(jnp.float32),         # biases stay f32
        "R_cat": R_cat.astype(jnp.bfloat16),
        "Rb_cat": Rb_cat.astype(jnp.float32),
        "Wo": Wo.astype(jnp.bfloat16),
        "bo": bo.astype(jnp.float32),
    }


# ----------------------------------- wrapper ---------------------------------
@jax.jit
def recurrent_highway(tokens, packed):
    # Embedding lookup: XLA gather glue (no clean Pallas win at these shapes).
    emb = jnp.take(packed["embedding"], tokens, axis=0)             # (B, T, I)
    B, T, _ = emb.shape
    R_cat, Rb_cat = packed["R_cat"], packed["Rb_cat"]
    L, H = R_cat.shape[0], R_cat.shape[1]
    H3 = 3 * H
    Wo, bo = packed["Wo"], packed["bo"]
    V_pad = Wo.shape[-1]
    V = packed["embedding"].shape[0]

    # ---- hoisted input projection: one parallel XLA GEMM over all T steps ----
    x = jnp.transpose(emb, (1, 0, 2)).astype(jnp.bfloat16)          # (T, B, I) time-major
    wx = jnp.einsum("tbi,ih->tbh", x, packed["W_cat"],
                    preferred_element_type=jnp.float32) + packed["Wb_cat"]  # (T, B, 3H) f32

    # ---- tiling: batch tiles (parallel axis) x time blocks (sequential) ------
    B_pad = _round_up(B, 8)                  # f32 sublane tile
    TB = B_pad if B_pad <= 64 else 64        # batch tile (gives v7x's 2nd TC work)
    B_pad = _round_up(B_pad, TB)
    TT = min(4, T)                           # time steps per grid step
    T_pad = _round_up(T, TT)
    wx = jnp.pad(wx, ((0, T_pad - T), (0, B_pad - B), (0, 0)))

    hidden = pl.pallas_call(
        functools.partial(rhn_recurrence_kernel, TT=TT, L=L),
        out_shape=jax.ShapeDtypeStruct((T_pad, L, B_pad, H), jnp.bfloat16),
        grid_spec=pltpu.PrefetchScalarGridSpec(
            num_scalar_prefetch=0,
            grid=(B_pad // TB, T_pad // TT),
            in_specs=[
                pl.BlockSpec((TT, TB, H3), lambda b, t: (t, b, 0)),      # wx time/batch tile
                pl.BlockSpec((L, H, H3), lambda b, t: (0, 0, 0),         # R: VMEM-resident,
                             pipeline_mode=pl.Buffered(1)),              #    single-buffered
                pl.BlockSpec((L, 1, H3), lambda b, t: (0, 0, 0),
                             pipeline_mode=pl.Buffered(1)),
            ],
            out_specs=pl.BlockSpec((TT, L, TB, H), lambda b, t: (t, 0, b, 0)),
            scratch_shapes=[pltpu.VMEM((TB, H), jnp.float32)],           # carried hidden
        ),
        compiler_params=pltpu.CompilerParams(
            dimension_semantics=("parallel", "arbitrary"),   # batch parallel, time serial
            vmem_limit_bytes=48 * 1024 * 1024),              # headroom under v7x's 64 MiB
    )(wx, R_cat, Rb_cat)

    # ---- output projection: big parallel GEMM, tiled over rows and vocab -----
    hidden = hidden[:T, :, :B, :]                # drop padded time steps / batch rows
    rows = T * L * B
    h_flat = hidden.reshape(rows, H)             # (T*L*B, H) bf16, cat ordering
    TR = 512 if rows >= 512 else (256 if rows >= 256 else 128)
    rows_pad = _round_up(rows, TR)
    if rows_pad != rows:
        h_flat = jnp.pad(h_flat, ((0, rows_pad - rows), (0, 0)))
    TV = 512 if V_pad >= 512 else V_pad          # lane-dense vocab tile

    out_pad = pl.pallas_call(
        out_projection_kernel,
        out_shape=jax.ShapeDtypeStruct((rows_pad, V_pad), jnp.float32),
        grid_spec=pltpu.PrefetchScalarGridSpec(
            num_scalar_prefetch=0,
            grid=(rows_pad // TR, V_pad // TV),
            in_specs=[
                pl.BlockSpec((TR, H), lambda i, j: (i, 0)),
                pl.BlockSpec((H, TV), lambda i, j: (0, j)),
                pl.BlockSpec((1, TV), lambda i, j: (0, j)),
            ],
            out_specs=pl.BlockSpec((TR, TV), lambda i, j: (i, j)),
        ),
        compiler_params=pltpu.CompilerParams(
            dimension_semantics=("parallel", "parallel"),
            vmem_limit_bytes=48 * 1024 * 1024),
    )(h_flat, Wo, bo)

    # Rows are already (step-major, tick, batch) == torch.cat(layer_outputs).
    return out_pad[:rows, :V]


# ------------------------------ pure-JAX reference ----------------------------
def reference(tokens, params, L):
    emb = jnp.take(params["embedding"], tokens, axis=0)
    B, T, _ = emb.shape
    H = params["R"].shape[-1]
    h = jnp.zeros((B, H), jnp.float32)
    outs = []
    for step in range(T):
        xs = emb[:, step, :]
        for tick in range(L):
            r, rb = params["R"][tick], params["Rb"][tick]
            r_h = h @ r[0] + rb[0]
            r_t = h @ r[1] + rb[1]
            r_c = h @ r[2] + rb[2]
            if tick == 0:
                w, wb = params["W"], params["Wb"]
                hl = xs @ w[0] + wb[0] + r_h
                tl = xs @ w[2] + wb[2] + r_c
                cl = xs @ w[1] + wb[1] + r_t
            else:
                hl, tl, cl = r_h, r_c, r_t
            h = hl * tl + h * cl
            outs.append(h @ params["Wo"] + params["bo"])
    return jnp.concatenate(outs, axis=0)


# ------------------------------------ main ------------------------------------
if __name__ == "__main__":
    BATCH, SEQ = 2, 8
    INPUT, HIDDEN, VOCAB, L = 32, 32, 64, 3

    key = jax.random.PRNGKey(0)
    ks = jax.random.split(key, 9)
    sH = 1.0 / jnp.sqrt(HIDDEN)
    sI = 1.0 / jnp.sqrt(INPUT)

    params = {
        "embedding": jax.random.normal(ks[0], (VOCAB, INPUT), jnp.float32) * 0.1,
        # W_H / W_T / W_C  (stored transposed: (in, out))
        "W":  jax.random.uniform(ks[1], (3, INPUT, HIDDEN), jnp.float32, -sI, sI),
        "Wb": jax.random.uniform(ks[2], (3, HIDDEN), jnp.float32, -sI, sI),
        # per-tick R_H / R_T / R_C
        "R":  jax.random.uniform(ks[3], (L, 3, HIDDEN, HIDDEN), jnp.float32, -sH, sH),
        "Rb": jax.random.uniform(ks[4], (L, 3, HIDDEN), jnp.float32, -sH, sH),
        # out_embedding
        "Wo": jax.random.uniform(ks[5], (HIDDEN, VOCAB), jnp.float32, -sH, sH),
        "bo": jax.random.uniform(ks[6], (1, VOCAB), jnp.float32, -sH, sH),
    }

    tokens = jax.random.randint(ks[7], (BATCH, SEQ), 0, VOCAB, dtype=jnp.int32)

    packed = pack_params(params)          # one-time fused / bf16 / padded weights
    out = recurrent_highway(tokens, packed)
    out = jax.block_until_ready(out)

    ref = reference(tokens, params, L)
    assert out.shape == (SEQ * L * BATCH, VOCAB), out.shape
    max_err = float(jnp.max(jnp.abs(out - ref)))
    assert jnp.allclose(out, ref, rtol=1e-2, atol=1e-2), max_err

    print("KERNEL_OK")
</pallas_src>

<mosaic_0001>
module attributes {stable_mosaic.version = 11 : i64} {
  func.func @out_projection_kernel(%arg0: i32, %arg1: i32, %arg2: memref<128x32xbf16, #tpu.memory_space<vmem>>, %arg3: memref<32x64xbf16, #tpu.memory_space<vmem>>, %arg4: memref<1x64xf32, #tpu.memory_space<vmem>>, %arg5: memref<128x64xf32, #tpu.memory_space<vmem>>) attributes {dimension_semantics = [#tpu.dimension_semantics<parallel>, #tpu.dimension_semantics<parallel>], iteration_bounds = array<i64: 1, 1>, scalar_prefetch = 0 : i64, scratch_operands = 0 : i64, tpu.core_type = #tpu.core_type<tc>, window_params = [{transform_indices = @transform_0, window_bounds = array<i64: 128, 32>}, {transform_indices = @transform_1, window_bounds = array<i64: 32, 64>}, {transform_indices = @transform_2, window_bounds = array<i64: 1, 64>}, {transform_indices = @transform_3, window_bounds = array<i64: 128, 64>}]} {
    %c0 = arith.constant 0 : index
    %c0_0 = arith.constant 0 : index
    %0 = vector.load %arg2[%c0, %c0_0] : memref<128x32xbf16, #tpu.memory_space<vmem>>, vector<128x32xbf16>
    %c0_1 = arith.constant 0 : index
    %c0_2 = arith.constant 0 : index
    %1 = vector.load %arg3[%c0_1, %c0_2] : memref<32x64xbf16, #tpu.memory_space<vmem>>, vector<32x64xbf16>
    %cst = arith.constant dense<0.000000e+00> : vector<128x64xf32>
    %2 = tpu.matmul %0, %1, %cst {dimension_numbers = #tpu.dot_dimension_numbers<[1], [0], [0], [1], [0, 0, 1, 1], [], []>} : vector<128x32xbf16>, vector<32x64xbf16>, vector<128x64xf32> -> vector<128x64xf32>
    %c0_3 = arith.constant 0 : index
    %c0_4 = arith.constant 0 : index
    %3 = vector.load %arg4[%c0_3, %c0_4] : memref<1x64xf32, #tpu.memory_space<vmem>>, vector<1x64xf32>
    %4 = vector.broadcast %3 : vector<1x64xf32> to vector<128x64xf32>
    %5 = arith.addf %2, %4 : vector<128x64xf32>
    %c0_5 = arith.constant 0 : index
    %c0_6 = arith.constant 0 : index
    %6 = vector.load %arg5[%c0_5, %c0_6] : memref<128x64xf32, #tpu.memory_space<vmem>>, vector<128x64xf32>
    tpu.vector_store %arg5[%c0_5, %c0_6], %5 {strides = array<i32>} : memref<128x64xf32, #tpu.memory_space<vmem>>, vector<128x64xf32>,
    return
  }
  func.func @transform_0(%arg0: i32, %arg1: i32) -> (i32, i32) {
    %c0_i32 = arith.constant 0 : i32
    %c0_i32_0 = arith.constant 0 : i32
    return %arg0, %c0_i32 : i32, i32
  }
  func.func @transform_1(%arg0: i32, %arg1: i32) -> (i32, i32) {
    %c0_i32 = arith.constant 0 : i32
    %c0_i32_0 = arith.constant 0 : i32
    return %c0_i32, %arg1 : i32, i32
  }
  func.func @transform_2(%arg0: i32, %arg1: i32) -> (i32, i32) {
    %c0_i32 = arith.constant 0 : i32
    %c0_i32_0 = arith.constant 0 : i32
    return %c0_i32, %arg1 : i32, i32
  }
  func.func @transform_3(%arg0: i32, %arg1: i32) -> (i32, i32) {
    %c0_i32 = arith.constant 0 : i32
    return %arg0, %arg1 : i32, i32
  }
}

module attributes {stable_mosaic.version = 11 : i64} {
  func.func @rhn_recurrence_kernel(%arg0: i32, %arg1: i32, %arg2: memref<4x8x96xf32, #tpu.memory_space<vmem>>, %arg3: memref<3x32x96xbf16, #tpu.memory_space<vmem>>, %arg4: memref<3x1x96xf32, #tpu.memory_space<vmem>>, %arg5: memref<4x3x8x32xbf16, #tpu.memory_space<vmem>>, %arg6: memref<8x32xf32, #tpu.memory_space<vmem>>) attributes {dimension_semantics = [#tpu.dimension_semantics<parallel>, #tpu.dimension_semantics<arbitrary>], iteration_bounds = array<i64: 1, 2>, scalar_prefetch = 0 : i64, scratch_operands = 1 : i64, tpu.core_type = #tpu.core_type<tc>, window_params = [{transform_indices = @transform_0, window_bounds = array<i64: 4, 8, 96>}, {pipeline_mode = #tpu.pipeline_mode<synchronous>, transform_indices = @transform_1, window_bounds = array<i64: 3, 32, 96>}, {pipeline_mode = #tpu.pipeline_mode<synchronous>, transform_indices = @transform_2, window_bounds = array<i64: 3, 1, 96>}, {transform_indices = @transform_3, window_bounds = array<i64: 4, 3, 8, 32>}]} {
    %c0_i32 = arith.constant 0 : i32
    %0 = arith.cmpi eq, %arg1, %c0_i32 : i32
    %1 = arith.extui %0 : i1 to i32
    %c0_i32_0 = arith.constant 0 : i32
    %2 = arith.cmpi ne, %1, %c0_i32_0 : i32
    scf.if %2 {
      %cst_144 = arith.constant 0.000000e+00 : f32
      %233 = vector.broadcast %cst_144 : f32 to vector<8x32xf32>
      %c0_145 = arith.constant 0 : index
      %c0_146 = arith.constant 0 : index
      %234 = vector.load %arg6[%c0_145, %c0_146] : memref<8x32xf32, #tpu.memory_space<vmem>>, vector<8x32xf32>
      tpu.vector_store %arg6[%c0_145, %c0_146], %233 {strides = array<i32>} : memref<8x32xf32, #tpu.memory_space<vmem>>, vector<8x32xf32>,
    } else {
    }
    %c0 = arith.constant 0 : index
    %c0_1 = arith.constant 0 : index
    %3 = vector.load %arg6[%c0, %c0_1] : memref<8x32xf32, #tpu.memory_space<vmem>>, vector<8x32xf32>
    %c0_2 = arith.constant 0 : index
    %c0_3 = arith.constant 0 : index
    %c0_4 = arith.constant 0 : index
    %4 = vector.load %arg2[%c0_2, %c0_3, %c0_4] : memref<4x8x96xf32, #tpu.memory_space<vmem>>, vector<1x8x96xf32>
    %5 = vector.shape_cast %4 : vector<1x8x96xf32> to vector<8x96xf32>
    %6 = arith.truncf %3 : vector<8x32xf32> to vector<8x32xbf16>
    %c0_5 = arith.constant 0 : index
    %c0_6 = arith.constant 0 : index
    %c0_7 = arith.constant 0 : index
    %7 = vector.load %arg3[%c0_5, %c0_6, %c0_7] : memref<3x32x96xbf16, #tpu.memory_space<vmem>>, vector<1x32x96xbf16>
    %8 = vector.shape_cast %7 : vector<1x32x96xbf16> to vector<32x96xbf16>
    %cst = arith.constant dense<0.000000e+00> : vector<8x96xf32>
    %9 = tpu.matmul %6, %8, %cst {dimension_numbers = #tpu.dot_dimension_numbers<[1], [0], [0], [1], [0, 0, 1, 1], [], []>} : vector<8x32xbf16>, vector<32x96xbf16>, vector<8x96xf32> -> vector<8x96xf32>
    %c0_8 = arith.constant 0 : index
    %c0_9 = arith.constant 0 : index
    %c0_10 = arith.constant 0 : index
    %10 = vector.load %arg4[%c0_8, %c0_9, %c0_10] : memref<3x1x96xf32, #tpu.memory_space<vmem>>, vector<1x1x96xf32>
    %11 = vector.shape_cast %10 : vector<1x1x96xf32> to vector<1x96xf32>
    %12 = vector.broadcast %11 : vector<1x96xf32> to vector<8x96xf32>
    %13 = arith.addf %9, %12 : vector<8x96xf32>
    %14 = arith.addf %13, %5 : vector<8x96xf32>
    %15 = vector.extract_strided_slice %14 {offsets = [0, 0], sizes = [8, 32], strides = [1, 1]} : vector<8x96xf32> to vector<8x32xf32>
    %16 = vector.extract_strided_slice %14 {offsets = [0, 32], sizes = [8, 32], strides = [1, 1]} : vector<8x96xf32> to vector<8x32xf32>
    %17 = vector.extract_strided_slice %14 {offsets = [0, 64], sizes = [8, 32], strides = [1, 1]} : vector<8x96xf32> to vector<8x32xf32>
    %18 = arith.mulf %15, %16 : vector<8x32xf32>
    %19 = arith.mulf %3, %17 : vector<8x32xf32>
    %20 = arith.addf %18, %19 : vector<8x32xf32>
    %21 = arith.truncf %20 : vector<8x32xf32> to vector<8x32xbf16>
    %c0_11 = arith.constant 0 : index
    %c0_12 = arith.constant 0 : index
    %c0_13 = arith.constant 0 : index
    %c0_14 = arith.constant 0 : index
    %22 = vector.load %arg5[%c0_11, %c0_12, %c0_13, %c0_14] : memref<4x3x8x32xbf16, #tpu.memory_space<vmem>>, vector<1x1x8x32xbf16>
    %23 = vector.shape_cast %22 : vector<1x1x8x32xbf16> to vector<8x32xbf16>
    %24 = vector.shape_cast %21 : vector<8x32xbf16> to vector<1x1x8x32xbf16>
    tpu.vector_store %arg5[%c0_11, %c0_12, %c0_13, %c0_14], %24 {strides = array<i32>} : memref<4x3x8x32xbf16, #tpu.memory_space<vmem>>, vector<1x1x8x32xbf16>,
    %25 = arith.truncf %20 : vector<8x32xf32> to vector<8x32xbf16>
    %c1 = arith.constant 1 : index
    %c0_15 = arith.constant 0 : index
    %c0_16 = arith.constant 0 : index
    %26 = vector.load %arg3[%c1, %c0_15, %c0_16] : memref<3x32x96xbf16, #tpu.memory_space<vmem>>, vector<1x32x96xbf16>
    %27 = vector.shape_cast %26 : vector<1x32x96xbf16> to vector<32x96xbf16>
    %cst_17 = arith.constant dense<0.000000e+00> : vector<8x96xf32>
    %28 = tpu.matmul %25, %27, %cst_17 {dimension_numbers = #tpu.dot_dimension_numbers<[1], [0], [0], [1], [0, 0, 1, 1], [], []>} : vector<8x32xbf16>, vector<32x96xbf16>, vector<8x96xf32> -> vector<8x96xf32>
    %c1_18 = arith.constant 1 : index
    %c0_19 = arith.constant 0 : index
    %c0_20 = arith.constant 0 : index
    %29 = vector.load %arg4[%c1_18, %c0_19, %c0_20] : memref<3x1x96xf32, #tpu.memory_space<vmem>>, vector<1x1x96xf32>
    %30 = vector.shape_cast %29 : vector<1x1x96xf32> to vector<1x96xf32>
    %31 = vector.broadcast %30 : vector<1x96xf32> to vector<8x96xf32>
    %32 = arith.addf %28, %31 : vector<8x96xf32>
    %33 = vector.extract_strided_slice %32 {offsets = [0, 0], sizes = [8, 32], strides = [1, 1]} : vector<8x96xf32> to vector<8x32xf32>
    %34 = vector.extract_strided_slice %32 {offsets = [0, 32], sizes = [8, 32], strides = [1, 1]} : vector<8x96xf32> to vector<8x32xf32>
    %35 = vector.extract_strided_slice %32 {offsets = [0, 64], sizes = [8, 32], strides = [1, 1]} : vector<8x96xf32> to vector<8x32xf32>
    %36 = arith.mulf %33, %34 : vector<8x32xf32>
    %37 = arith.mulf %20, %35 : vector<8x32xf32>
    %38 = arith.addf %36, %37 : vector<8x32xf32>
    %39 = arith.truncf %38 : vector<8x32xf32> to vector<8x32xbf16>
    %c0_21 = arith.constant 0 : index
    %c1_22 = arith.constant 1 : index
    %c0_23 = arith.constant 0 : index
    %c0_24 = arith.constant 0 : index
    %40 = vector.load %arg5[%c0_21, %c1_22, %c0_23, %c0_24] : memref<4x3x8x32xbf16, #tpu.memory_space<vmem>>, vector<1x1x8x32xbf16>
    %41 = vector.shape_cast %40 : vector<1x1x8x32xbf16> to vector<8x32xbf16>
    %42 = vector.shape_cast %39 : vector<8x32xbf16> to vector<1x1x8x32xbf16>
    tpu.vector_store %arg5[%c0_21, %c1_22, %c0_23, %c0_24], %42 {strides = array<i32>} : memref<4x3x8x32xbf16, #tpu.memory_space<vmem>>, vector<1x1x8x32xbf16>,
    %43 = arith.truncf %38 : vector<8x32xf32> to vector<8x32xbf16>
    %c2 = arith.constant 2 : index
    %c0_25 = arith.constant 0 : index
    %c0_26 = arith.constant 0 : index
    %44 = vector.load %arg3[%c2, %c0_25, %c0_26] : memref<3x32x96xbf16, #tpu.memory_space<vmem>>, vector<1x32x96xbf16>
    %45 = vector.shape_cast %44 : vector<1x32x96xbf16> to vector<32x96xbf16>
    %cst_27 = arith.constant dense<0.000000e+00> : vector<8x96xf32>
    %46 = tpu.matmul %43, %45, %cst_27 {dimension_numbers = #tpu.dot_dimension_numbers<[1], [0], [0], [1], [0, 0, 1, 1], [], []>} : vector<8x32xbf16>, vector<32x96xbf16>, vector<8x96xf32> -> vector<8x96xf32>
    %c2_28 = arith.constant 2 : index
    %c0_29 = arith.constant 0 : index
    %c0_30 = arith.constant 0 : index
    %47 = vector.load %arg4[%c2_28, %c0_29, %c0_30] : memref<3x1x96xf32, #tpu.memory_space<vmem>>, vector<1x1x96xf32>
    %48 = vector.shape_cast %47 : vector<1x1x96xf32> to vector<1x96xf32>
    %49 = vector.broadcast %48 : vector<1x96xf32> to vector<8x96xf32>
    %50 = arith.addf %46, %49 : vector<8x96xf32>
    %51 = vector.extract_strided_slice %50 {offsets = [0, 0], sizes = [8, 32], strides = [1, 1]} : vector<8x96xf32> to vector<8x32xf32>
    %52 = vector.extract_strided_slice %50 {offsets = [0, 32], sizes = [8, 32], strides = [1, 1]} : vector<8x96xf32> to vector<8x32xf32>
    %53 = vector.extract_strided_slice %50 {offsets = [0, 64], sizes = [8, 32], strides = [1, 1]} : vector<8x96xf32> to vector<8x32xf32>
    %54 = arith.mulf %51, %52 : vector<8x32xf32>
    %55 = arith.mulf %38, %53 : vector<8x32xf32>
    %56 = arith.addf %54, %55 : vector<8x32xf32>
    %57 = arith.truncf %56 : vector<8x32xf32> to vector<8x32xbf16>
    %c0_31 = arith.constant 0 : index
    %c2_32 = arith.constant 2 : index
    %c0_33 = arith.constant 0 : index
    %c0_34 = arith.constant 0 : index
    %58 = vector.load %arg5[%c0_31, %c2_32, %c0_33, %c0_34] : memref<4x3x8x32xbf16, #tpu.memory_space<vmem>>, vector<1x1x8x32xbf16>
    %59 = vector.shape_cast %58 : vector<1x1x8x32xbf16> to vector<8x32xbf16>
    %60 = vector.shape_cast %57 : vector<8x32xbf16> to vector<1x1x8x32xbf16>
    tpu.vector_store %arg5[%c0_31, %c2_32, %c0_33, %c0_34], %60 {strides = array<i32>} : memref<4x3x8x32xbf16, #tpu.memory_space<vmem>>, vector<1x1x8x32xbf16>,
    %c1_35 = arith.constant 1 : index
    %c0_36 = arith.constant 0 : index
    %c0_37 = arith.constant 0 : index
    %61 = vector.load %arg2[%c1_35, %c0_36, %c0_37] : memref<4x8x96xf32, #tpu.memory_space<vmem>>, vector<1x8x96xf32>
    %62 = vector.shape_cast %61 : vector<1x8x96xf32> to vector<8x96xf32>
    %63 = arith.truncf %56 : vector<8x32xf32> to vector<8x32xbf16>
    %c0_38 = arith.constant 0 : index
    %c0_39 = arith.constant 0 : index
    %c0_40 = arith.constant 0 : index
    %64 = vector.load %arg3[%c0_38, %c0_39, %c0_40] : memref<3x32x96xbf16, #tpu.memory_space<vmem>>, vector<1x32x96xbf16>
    %65 = vector.shape_cast %64 : vector<1x32x96xbf16> to vector<32x96xbf16>
    %cst_41 = arith.constant dense<0.000000e+00> : vector<8x96xf32>
    %66 = tpu.matmul %63, %65, %cst_41 {dimension_numbers = #tpu.dot_dimension_numbers<[1], [0], [0], [1], [0, 0, 1, 1], [], []>} : vector<8x32xbf16>, vector<32x96xbf16>, vector<8x96xf32> -> vector<8x96xf32>
    %c0_42 = arith.constant 0 : index
    %c0_43 = arith.constant 0 : index
    %c0_44 = arith.constant 0 : index
    %67 = vector.load %arg4[%c0_42, %c0_43, %c0_44] : memref<3x1x96xf32, #tpu.memory_space<vmem>>, vector<1x1x96xf32>
    %68 = vector.shape_cast %67 : vector<1x1x96xf32> to vector<1x96xf32>
    %69 = vector.broadcast %68 : vector<1x96xf32> to vector<8x96xf32>
    %70 = arith.addf %66, %69 : vector<8x96xf32>
    %71 = arith.addf %70, %62 : vector<8x96xf32>
    %72 = vector.extract_strided_slice %71 {offsets = [0, 0], sizes = [8, 32], strides = [1, 1]} : vector<8x96xf32> to vector<8x32xf32>
    %73 = vector.extract_strided_slice %71 {offsets = [0, 32], sizes = [8, 32], strides = [1, 1]} : vector<8x96xf32> to vector<8x32xf32>
    %74 = vector.extract_strided_slice %71 {offsets = [0, 64], sizes = [8, 32], strides = [1, 1]} : vector<8x96xf32> to vector<8x32xf32>
    %75 = arith.mulf %72, %73 : vector<8x32xf32>
    %76 = arith.mulf %56, %74 : vector<8x32xf32>
    %77 = arith.addf %75, %76 : vector<8x32xf32>
    %78 = arith.truncf %77 : vector<8x32xf32> to vector<8x32xbf16>
    %c1_45 = arith.constant 1 : index
    %c0_46 = arith.constant 0 : index
    %c0_47 = arith.constant 0 : index
    %c0_48 = arith.constant 0 : index
    %79 = vector.load %arg5[%c1_45, %c0_46, %c0_47, %c0_48] : memref<4x3x8x32xbf16, #tpu.memory_space<vmem>>, vector<1x1x8x32xbf16>
    %80 = vector.shape_cast %79 : vector<1x1x8x32xbf16> to vector<8x32xbf16>
    %81 = vector.shape_cast %78 : vector<8x32xbf16> to vector<1x1x8x32xbf16>
    tpu.vector_store %arg5[%c1_45, %c0_46, %c0_47, %c0_48], %81 {strides = array<i32>} : memref<4x3x8x32xbf16, #tpu.memory_space<vmem>>, vector<1x1x8x32xbf16>,
    %82 = arith.truncf %77 : vector<8x32xf32> to vector<8x32xbf16>
    %c1_49 = arith.constant 1 : index
    %c0_50 = arith.constant 0 : index
    %c0_51 = arith.constant 0 : index
    %83 = vector.load %arg3[%c1_49, %c0_50, %c0_51] : memref<3x32x96xbf16, #tpu.memory_space<vmem>>, vector<1x32x96xbf16>
    %84 = vector.shape_cast %83 : vector<1x32x96xbf16> to vector<32x96xbf16>
    %cst_52 = arith.constant dense<0.000000e+00> : vector<8x96xf32>
    %85 = tpu.matmul %82, %84, %cst_52 {dimension_numbers = #tpu.dot_dimension_numbers<[1], [0], [0], [1], [0, 0, 1, 1], [], []>} : vector<8x32xbf16>, vector<32x96xbf16>, vector<8x96xf32> -> vector<8x96xf32>
    %c1_53 = arith.constant 1 : index
    %c0_54 = arith.constant 0 : index
    %c0_55 = arith.constant 0 : index
    %86 = vector.load %arg4[%c1_53, %c0_54, %c0_55] : memref<3x1x96xf32, #tpu.memory_space<vmem>>, vector<1x1x96xf32>
    %87 = vector.shape_cast %86 : vector<1x1x96xf32> to vector<1x96xf32>
    %88 = vector.broadcast %87 : vector<1x96xf32> to vector<8x96xf32>
    %89 = arith.addf %85, %88 : vector<8x96xf32>
    %90 = vector.extract_strided_slice %89 {offsets = [0, 0], sizes = [8, 32], strides = [1, 1]} : vector<8x96xf32> to vector<8x32xf32>
    %91 = vector.extract_strided_slice %89 {offsets = [0, 32], sizes = [8, 32], strides = [1, 1]} : vector<8x96xf32> to vector<8x32xf32>
    %92 = vector.extract_strided_slice %89 {offsets = [0, 64], sizes = [8, 32], strides = [1, 1]} : vector<8x96xf32> to vector<8x32xf32>
    %93 = arith.mulf %90, %91 : vector<8x32xf32>
    %94 = arith.mulf %77, %92 : vector<8x32xf32>
    %95 = arith.addf %93, %94 : vector<8x32xf32>
    %96 = arith.truncf %95 : vector<8x32xf32> to vector<8x32xbf16>
    %c1_56 = arith.constant 1 : index
    %c1_57 = arith.constant 1 : index
    %c0_58 = arith.constant 0 : index
    %c0_59 = arith.constant 0 : index
    %97 = vector.load %arg5[%c1_56, %c1_57, %c0_58, %c0_59] : memref<4x3x8x32xbf16, #tpu.memory_space<vmem>>, vector<1x1x8x32xbf16>
    %98 = vector.shape_cast %97 : vector<1x1x8x32xbf16> to vector<8x32xbf16>
    %99 = vector.shape_cast %96 : vector<8x32xbf16> to vector<1x1x8x32xbf16>
    tpu.vector_store %arg5[%c1_56, %c1_57, %c0_58, %c0_59], %99 {strides = array<i32>} : memref<4x3x8x32xbf16, #tpu.memory_space<vmem>>, vector<1x1x8x32xbf16>,
    %100 = arith.truncf %95 : vector<8x32xf32> to vector<8x32xbf16>
    %c2_60 = arith.constant 2 : index
    %c0_61 = arith.constant 0 : index
    %c0_62 = arith.constant 0 : index
    %101 = vector.load %arg3[%c2_60, %c0_61, %c0_62] : memref<3x32x96xbf16, #tpu.memory_space<vmem>>, vector<1x32x96xbf16>
    %102 = vector.shape_cast %101 : vector<1x32x96xbf16> to vector<32x96xbf16>
    %cst_63 = arith.constant dense<0.000000e+00> : vector<8x96xf32>
    %103 = tpu.matmul %100, %102, %cst_63 {dimension_numbers = #tpu.dot_dimension_numbers<[1], [0], [0], [1], [0, 0, 1, 1], [], []>} : vector<8x32xbf16>, vector<32x96xbf16>, vector<8x96xf32> -> vector<8x96xf32>
    %c2_64 = arith.constant 2 : index
    %c0_65 = arith.constant 0 : index
    %c0_66 = arith.constant 0 : index
    %104 = vector.load %arg4[%c2_64, %c0_65, %c0_66] : memref<3x1x96xf32, #tpu.memory_space<vmem>>, vector<1x1x96xf32>
    %105 = vector.shape_cast %104 : vector<1x1x96xf32> to vector<1x96xf32>
    %106 = vector.broadcast %105 : vector<1x96xf32> to vector<8x96xf32>
    %107 = arith.addf %103, %106 : vector<8x96xf32>
    %108 = vector.extract_strided_slice %107 {offsets = [0, 0], sizes = [8, 32], strides = [1, 1]} : vector<8x96xf32> to vector<8x32xf32>
    %109 = vector.extract_strided_slice %107 {offsets = [0, 32], sizes = [8, 32], strides = [1, 1]} : vector<8x96xf32> to vector<8x32xf32>
    %110 = vector.extract_strided_slice %107 {offsets = [0, 64], sizes = [8, 32], strides = [1, 1]} : vector<8x96xf32> to vector<8x32xf32>
    %111 = arith.mulf %108, %109 : vector<8x32xf32>
    %112 = arith.mulf %95, %110 : vector<8x32xf32>
    %113 = arith.addf %111, %112 : vector<8x32xf32>
    %114 = arith.truncf %113 : vector<8x32xf32> to vector<8x32xbf16>
    %c1_67 = arith.constant 1 : index
    %c2_68 = arith.constant 2 : index
    %c0_69 = arith.constant 0 : index
    %c0_70 = arith.constant 0 : index
    %115 = vector.load %arg5[%c1_67, %c2_68, %c0_69, %c0_70] : memref<4x3x8x32xbf16, #tpu.memory_space<vmem>>, vector<1x1x8x32xbf16>
    %116 = vector.shape_cast %115 : vector<1x1x8x32xbf16> to vector<8x32xbf16>
    %117 = vector.shape_cast %114 : vector<8x32xbf16> to vector<1x1x8x32xbf16>
    tpu.vector_store %arg5[%c1_67, %c2_68, %c0_69, %c0_70], %117 {strides = array<i32>} : memref<4x3x8x32xbf16, #tpu.memory_space<vmem>>, vector<1x1x8x32xbf16>,
    %c2_71 = arith.constant 2 : index
    %c0_72 = arith.constant 0 : index
    %c0_73 = arith.constant 0 : index
    %118 = vector.load %arg2[%c2_71, %c0_72, %c0_73] : memref<4x8x96xf32, #tpu.memory_space<vmem>>, vector<1x8x96xf32>
    %119 = vector.shape_cast %118 : vector<1x8x96xf32> to vector<8x96xf32>
    %120 = arith.truncf %113 : vector<8x32xf32> to vector<8x32xbf16>
    %c0_74 = arith.constant 0 : index
    %c0_75 = arith.constant 0 : index
    %c0_76 = arith.constant 0 : index
    %121 = vector.load %arg3[%c0_74, %c0_75, %c0_76] : memref<3x32x96xbf16, #tpu.memory_space<vmem>>, vector<1x32x96xbf16>
    %122 = vector.shape_cast %121 : vector<1x32x96xbf16> to vector<32x96xbf16>
    %cst_77 = arith.constant dense<0.000000e+00> : vector<8x96xf32>
    %123 = tpu.matmul %120, %122, %cst_77 {dimension_numbers = #tpu.dot_dimension_numbers<[1], [0], [0], [1], [0, 0, 1, 1], [], []>} : vector<8x32xbf16>, vector<32x96xbf16>, vector<8x96xf32> -> vector<8x96xf32>
    %c0_78 = arith.constant 0 : index
    %c0_79 = arith.constant 0 : index
    %c0_80 = arith.constant 0 : index
    %124 = vector.load %arg4[%c0_78, %c0_79, %c0_80] : memref<3x1x96xf32, #tpu.memory_space<vmem>>, vector<1x1x96xf32>
    %125 = vector.shape_cast %124 : vector<1x1x96xf32> to vector<1x96xf32>
    %126 = vector.broadcast %125 : vector<1x96xf32> to vector<8x96xf32>
    %127 = arith.addf %123, %126 : vector<8x96xf32>
    %128 = arith.addf %127, %119 : vector<8x96xf32>
    %129 = vector.extract_strided_slice %128 {offsets = [0, 0], sizes = [8, 32], strides = [1, 1]} : vector<8x96xf32> to vector<8x32xf32>
    %130 = vector.extract_strided_slice %128 {offsets = [0, 32], sizes = [8, 32], strides = [1, 1]} : vector<8x96xf32> to vector<8x32xf32>
    %131 = vector.extract_strided_slice %128 {offsets = [0, 64], sizes = [8, 32], strides = [1, 1]} : vector<8x96xf32> to vector<8x32xf32>
    %132 = arith.mulf %129, %130 : vector<8x32xf32>
    %133 = arith.mulf %113, %131 : vector<8x32xf32>
    %134 = arith.addf %132, %133 : vector<8x32xf32>
    %135 = arith.truncf %134 : vector<8x32xf32> to vector<8x32xbf16>
    %c2_81 = arith.constant 2 : index
    %c0_82 = arith.constant 0 : index
    %c0_83 = arith.constant 0 : index
    %c0_84 = arith.constant 0 : index
    %136 = vector.load %arg5[%c2_81, %c0_82, %c0_83, %c0_84] : memref<4x3x8x32xbf16, #tpu.memory_space<vmem>>, vector<1x1x8x32xbf16>
    %137 = vector.shape_cast %136 : vector<1x1x8x32xbf16> to vector<8x32xbf16>
    %138 = vector.shape_cast %135 : vector<8x32xbf16> to vector<1x1x8x32xbf16>
    tpu.vector_store %arg5[%c2_81, %c0_82, %c0_83, %c0_84], %138 {strides = array<i32>} : memref<4x3x8x32xbf16, #tpu.memory_space<vmem>>, vector<1x1x8x32xbf16>,
    %139 = arith.truncf %134 : vector<8x32xf32> to vector<8x32xbf16>
    %c1_85 = arith.constant 1 : index
    %c0_86 = arith.constant 0 : index
    %c0_87 = arith.constant 0 : index
    %140 = vector.load %arg3[%c1_85, %c0_86, %c0_87] : memref<3x32x96xbf16, #tpu.memory_space<vmem>>, vector<1x32x96xbf16>
    %141 = vector.shape_cast %140 : vector<1x32x96xbf16> to vector<32x96xbf16>
    %cst_88 = arith.constant dense<0.000000e+00> : vector<8x96xf32>
    %142 = tpu.matmul %139, %141, %cst_88 {dimension_numbers = #tpu.dot_dimension_numbers<[1], [0], [0], [1], [0, 0, 1, 1], [], []>} : vector<8x32xbf16>, vector<32x96xbf16>, vector<8x96xf32> -> vector<8x96xf32>
    %c1_89 = arith.constant 1 : index
    %c0_90 = arith.constant 0 : index
    %c0_91 = arith.constant 0 : index
    %143 = vector.load %arg4[%c1_89, %c0_90, %c0_91] : memref<3x1x96xf32, #tpu.memory_space<vmem>>, vector<1x1x96xf32>
    %144 = vector.shape_cast %143 : vector<1x1x96xf32> to vector<1x96xf32>
    %145 = vector.broadcast %144 : vector<1x96xf32> to vector<8x96xf32>
    %146 = arith.addf %142, %145 : vector<8x96xf32>
    %147 = vector.extract_strided_slice %146 {offsets = [0, 0], sizes = [8, 32], strides = [1, 1]} : vector<8x96xf32> to vector<8x32xf32>
    %148 = vector.extract_strided_slice %146 {offsets = [0, 32], sizes = [8, 32], strides = [1, 1]} : vector<8x96xf32> to vector<8x32xf32>
    %149 = vector.extract_strided_slice %146 {offsets = [0, 64], sizes = [8, 32], strides = [1, 1]} : vector<8x96xf32> to vector<8x32xf32>
    %150 = arith.mulf %147, %148 : vector<8x32xf32>
    %151 = arith.mulf %134, %149 : vector<8x32xf32>
    %152 = arith.addf %150, %151 : vector<8x32xf32>
    %153 = arith.truncf %152 : vector<8x32xf32> to vector<8x32xbf16>
    %c2_92 = arith.constant 2 : index
    %c1_93 = arith.constant 1 : index
    %c0_94 = arith.constant 0 : index
    %c0_95 = arith.constant 0 : index
    %154 = vector.load %arg5[%c2_92, %c1_93, %c0_94, %c0_95] : memref<4x3x8x32xbf16, #tpu.memory_space<vmem>>, vector<1x1x8x32xbf16>
    %155 = vector.shape_cast %154 : vector<1x1x8x32xbf16> to vector<8x32xbf16>
    %156 = vector.shape_cast %153 : vector<8x32xbf16> to vector<1x1x8x32xbf16>
    tpu.vector_store %arg5[%c2_92, %c1_93, %c0_94, %c0_95], %156 {strides = array<i32>} : memref<4x3x8x32xbf16, #tpu.memory_space<vmem>>, vector<1x1x8x32xbf16>,
    %157 = arith.truncf %152 : vector<8x32xf32> to vector<8x32xbf16>
    %c2_96 = arith.constant 2 : index
    %c0_97 = arith.constant 0 : index
    %c0_98 = arith.constant 0 : index
    %158 = vector.load %arg3[%c2_96, %c0_97, %c0_98] : memref<3x32x96xbf16, #tpu.memory_space<vmem>>, vector<1x32x96xbf16>
    %159 = vector.shape_cast %158 : vector<1x32x96xbf16> to vector<32x96xbf16>
    %cst_99 = arith.constant dense<0.000000e+00> : vector<8x96xf32>
    %160 = tpu.matmul %157, %159, %cst_99 {dimension_numbers = #tpu.dot_dimension_numbers<[1], [0], [0], [1], [0, 0, 1, 1], [], []>} : vector<8x32xbf16>, vector<32x96xbf16>, vector<8x96xf32> -> vector<8x96xf32>
    %c2_100 = arith.constant 2 : index
    %c0_101 = arith.constant 0 : index
    %c0_102 = arith.constant 0 : index
    %161 = vector.load %arg4[%c2_100, %c0_101, %c0_102] : memref<3x1x96xf32, #tpu.memory_space<vmem>>, vector<1x1x96xf32>
    %162 = vector.shape_cast %161 : vector<1x1x96xf32> to vector<1x96xf32>
    %163 = vector.broadcast %162 : vector<1x96xf32> to vector<8x96xf32>
    %164 = arith.addf %160, %163 : vector<8x96xf32>
    %165 = vector.extract_strided_slice %164 {offsets = [0, 0], sizes = [8, 32], strides = [1, 1]} : vector<8x96xf32> to vector<8x32xf32>
    %166 = vector.extract_strided_slice %164 {offsets = [0, 32], sizes = [8, 32], strides = [1, 1]} : vector<8x96xf32> to vector<8x32xf32>
    %167 = vector.extract_strided_slice %164 {offsets = [0, 64], sizes = [8, 32], strides = [1, 1]} : vector<8x96xf32> to vector<8x32xf32>
    %168 = arith.mulf %165, %166 : vector<8x32xf32>
    %169 = arith.mulf %152, %167 : vector<8x32xf32>
    %170 = arith.addf %168, %169 : vector<8x32xf32>
    %171 = arith.truncf %170 : vector<8x32xf32> to vector<8x32xbf16>
    %c2_103 = arith.constant 2 : index
    %c2_104 = arith.constant 2 : index
    %c0_105 = arith.constant 0 : index
    %c0_106 = arith.constant 0 : index
    %172 = vector.load %arg5[%c2_103, %c2_104, %c0_105, %c0_106] : memref<4x3x8x32xbf16, #tpu.memory_space<vmem>>, vector<1x1x8x32xbf16>
    %173 = vector.shape_cast %172 : vector<1x1x8x32xbf16> to vector<8x32xbf16>
    %174 = vector.shape_cast %171 : vector<8x32xbf16> to vector<1x1x8x32xbf16>
    tpu.vector_store %arg5[%c2_103, %c2_104, %c0_105, %c0_106], %174 {strides = array<i32>} : memref<4x3x8x32xbf16, #tpu.memory_space<vmem>>, vector<1x1x8x32xbf16>,
    %c3 = arith.constant 3 : index
    %c0_107 = arith.constant 0 : index
    %c0_108 = arith.constant 0 : index
    %175 = vector.load %arg2[%c3, %c0_107, %c0_108] : memref<4x8x96xf32, #tpu.memory_space<vmem>>, vector<1x8x96xf32>
    %176 = vector.shape_cast %175 : vector<1x8x96xf32> to vector<8x96xf32>
    %177 = arith.truncf %170 : vector<8x32xf32> to vector<8x32xbf16>
    %c0_109 = arith.constant 0 : index
    %c0_110 = arith.constant 0 : index
    %c0_111 = arith.constant 0 : index
    %178 = vector.load %arg3[%c0_109, %c0_110, %c0_111] : memref<3x32x96xbf16, #tpu.memory_space<vmem>>, vector<1x32x96xbf16>
    %179 = vector.shape_cast %178 : vector<1x32x96xbf16> to vector<32x96xbf16>
    %cst_112 = arith.constant dense<0.000000e+00> : vector<8x96xf32>
    %180 = tpu.matmul %177, %179, %cst_112 {dimension_numbers = #tpu.dot_dimension_numbers<[1], [0], [0], [1], [0, 0, 1, 1], [], []>} : vector<8x32xbf16>, vector<32x96xbf16>, vector<8x96xf32> -> vector<8x96xf32>
    %c0_113 = arith.constant 0 : index
    %c0_114 = arith.constant 0 : index
    %c0_115 = arith.constant 0 : index
    %181 = vector.load %arg4[%c0_113, %c0_114, %c0_115] : memref<3x1x96xf32, #tpu.memory_space<vmem>>, vector<1x1x96xf32>
    %182 = vector.shape_cast %181 : vector<1x1x96xf32> to vector<1x96xf32>
    %183 = vector.broadcast %182 : vector<1x96xf32> to vector<8x96xf32>
    %184 = arith.addf %180, %183 : vector<8x96xf32>
    %185 = arith.addf %184, %176 : vector<8x96xf32>
    %186 = vector.extract_strided_slice %185 {offsets = [0, 0], sizes = [8, 32], strides = [1, 1]} : vector<8x96xf32> to vector<8x32xf32>
    %187 = vector.extract_strided_slice %185 {offsets = [0, 32], sizes = [8, 32], strides = [1, 1]} : vector<8x96xf32> to vector<8x32xf32>
    %188 = vector.extract_strided_slice %185 {offsets = [0, 64], sizes = [8, 32], strides = [1, 1]} : vector<8x96xf32> to vector<8x32xf32>
    %189 = arith.mulf %186, %187 : vector<8x32xf32>
    %190 = arith.mulf %170, %188 : vector<8x32xf32>
    %191 = arith.addf %189, %190 : vector<8x32xf32>
    %192 = arith.truncf %191 : vector<8x32xf32> to vector<8x32xbf16>
    %c3_116 = arith.constant 3 : index
    %c0_117 = arith.constant 0 : index
    %c0_118 = arith.constant 0 : index
    %c0_119 = arith.constant 0 : index
    %193 = vector.load %arg5[%c3_116, %c0_117, %c0_118, %c0_119] : memref<4x3x8x32xbf16, #tpu.memory_space<vmem>>, vector<1x1x8x32xbf16>
    %194 = vector.shape_cast %193 : vector<1x1x8x32xbf16> to vector<8x32xbf16>
    %195 = vector.shape_cast %192 : vector<8x32xbf16> to vector<1x1x8x32xbf16>
    tpu.vector_store %arg5[%c3_116, %c0_117, %c0_118, %c0_119], %195 {strides = array<i32>} : memref<4x3x8x32xbf16, #tpu.memory_space<vmem>>, vector<1x1x8x32xbf16>,
    %196 = arith.truncf %191 : vector<8x32xf32> to vector<8x32xbf16>
    %c1_120 = arith.constant 1 : index
    %c0_121 = arith.constant 0 : index
    %c0_122 = arith.constant 0 : index
    %197 = vector.load %arg3[%c1_120, %c0_121, %c0_122] : memref<3x32x96xbf16, #tpu.memory_space<vmem>>, vector<1x32x96xbf16>
    %198 = vector.shape_cast %197 : vector<1x32x96xbf16> to vector<32x96xbf16>
    %cst_123 = arith.constant dense<0.000000e+00> : vector<8x96xf32>
    %199 = tpu.matmul %196, %198, %cst_123 {dimension_numbers = #tpu.dot_dimension_numbers<[1], [0], [0], [1], [0, 0, 1, 1], [], []>} : vector<8x32xbf16>, vector<32x96xbf16>, vector<8x96xf32> -> vector<8x96xf32>
    %c1_124 = arith.constant 1 : index
    %c0_125 = arith.constant 0 : index
    %c0_126 = arith.constant 0 : index
    %200 = vector.load %arg4[%c1_124, %c0_125, %c0_126] : memref<3x1x96xf32, #tpu.memory_space<vmem>>, vector<1x1x96xf32>
    %201 = vector.shape_cast %200 : vector<1x1x96xf32> to vector<1x96xf32>
    %202 = vector.broadcast %201 : vector<1x96xf32> to vector<8x96xf32>
    %203 = arith.addf %199, %202 : vector<8x96xf32>
    %204 = vector.extract_strided_slice %203 {offsets = [0, 0], sizes = [8, 32], strides = [1, 1]} : vector<8x96xf32> to vector<8x32xf32>
    %205 = vector.extract_strided_slice %203 {offsets = [0, 32], sizes = [8, 32], strides = [1, 1]} : vector<8x96xf32> to vector<8x32xf32>
    %206 = vector.extract_strided_slice %203 {offsets = [0, 64], sizes = [8, 32], strides = [1, 1]} : vector<8x96xf32> to vector<8x32xf32>
    %207 = arith.mulf %204, %205 : vector<8x32xf32>
    %208 = arith.mulf %191, %206 : vector<8x32xf32>
    %209 = arith.addf %207, %208 : vector<8x32xf32>
    %210 = arith.truncf %209 : vector<8x32xf32> to vector<8x32xbf16>
    %c3_127 = arith.constant 3 : index
    %c1_128 = arith.constant 1 : index
    %c0_129 = arith.constant 0 : index
    %c0_130 = arith.constant 0 : index
    %211 = vector.load %arg5[%c3_127, %c1_128, %c0_129, %c0_130] : memref<4x3x8x32xbf16, #tpu.memory_space<vmem>>, vector<1x1x8x32xbf16>
    %212 = vector.shape_cast %211 : vector<1x1x8x32xbf16> to vector<8x32xbf16>
    %213 = vector.shape_cast %210 : vector<8x32xbf16> to vector<1x1x8x32xbf16>
    tpu.vector_store %arg5[%c3_127, %c1_128, %c0_129, %c0_130], %213 {strides = array<i32>} : memref<4x3x8x32xbf16, #tpu.memory_space<vmem>>, vector<1x1x8x32xbf16>,
    %214 = arith.truncf %209 : vector<8x32xf32> to vector<8x32xbf16>
    %c2_131 = arith.constant 2 : index
    %c0_132 = arith.constant 0 : index
    %c0_133 = arith.constant 0 : index
    %215 = vector.load %arg3[%c2_131, %c0_132, %c0_133] : memref<3x32x96xbf16, #tpu.memory_space<vmem>>, vector<1x32x96xbf16>
    %216 = vector.shape_cast %215 : vector<1x32x96xbf16> to vector<32x96xbf16>
    %cst_134 = arith.constant dense<0.000000e+00> : vector<8x96xf32>
    %217 = tpu.matmul %214, %216, %cst_134 {dimension_numbers = #tpu.dot_dimension_numbers<[1], [0], [0], [1], [0, 0, 1, 1], [], []>} : vector<8x32xbf16>, vector<32x96xbf16>, vector<8x96xf32> -> vector<8x96xf32>
    %c2_135 = arith.constant 2 : index
    %c0_136 = arith.constant 0 : index
    %c0_137 = arith.constant 0 : index
    %218 = vector.load %arg4[%c2_135, %c0_136, %c0_137] : memref<3x1x96xf32, #tpu.memory_space<vmem>>, vector<1x1x96xf32>
    %219 = vector.shape_cast %218 : vector<1x1x96xf32> to vector<1x96xf32>
    %220 = vector.broadcast %219 : vector<1x96xf32> to vector<8x96xf32>
    %221 = arith.addf %217, %220 : vector<8x96xf32>
    %222 = vector.extract_strided_slice %221 {offsets = [0, 0], sizes = [8, 32], strides = [1, 1]} : vector<8x96xf32> to vector<8x32xf32>
    %223 = vector.extract_strided_slice %221 {offsets = [0, 32], sizes = [8, 32], strides = [1, 1]} : vector<8x96xf32> to vector<8x32xf32>
    %224 = vector.extract_strided_slice %221 {offsets = [0, 64], sizes = [8, 32], strides = [1, 1]} : vector<8x96xf32> to vector<8x32xf32>
    %225 = arith.mulf %222, %223 : vector<8x32xf32>
    %226 = arith.mulf %209, %224 : vector<8x32xf32>
    %227 = arith.addf %225, %226 : vector<8x32xf32>
    %228 = arith.truncf %227 : vector<8x32xf32> to vector<8x32xbf16>
    %c3_138 = arith.constant 3 : index
    %c2_139 = arith.constant 2 : index
    %c0_140 = arith.constant 0 : index
    %c0_141 = arith.constant 0 : index
    %229 = vector.load %arg5[%c3_138, %c2_139, %c0_140, %c0_141] : memref<4x3x8x32xbf16, #tpu.memory_space<vmem>>, vector<1x1x8x32xbf16>
    %230 = vector.shape_cast %229 : vector<1x1x8x32xbf16> to vector<8x32xbf16>
    %231 = vector.shape_cast %228 : vector<8x32xbf16> to vector<1x1x8x32xbf16>
    tpu.vector_store %arg5[%c3_138, %c2_139, %c0_140, %c0_141], %231 {strides = array<i32>} : memref<4x3x8x32xbf16, #tpu.memory_space<vmem>>, vector<1x1x8x32xbf16>,
    %c0_142 = arith.constant 0 : index
    %c0_143 = arith.constant 0 : index
    %232 = vector.load %arg6[%c0_142, %c0_143] : memref<8x32xf32, #tpu.memory_space<vmem>>, vector<8x32xf32>
    tpu.vector_store %arg6[%c0_142, %c0_143], %227 {strides = array<i32>} : memref<8x32xf32, #tpu.memory_space<vmem>>, vector<8x32xf32>,
    return
  }
  func.func @transform_0(%arg0: i32, %arg1: i32) -> (i32, i32, i32) {
    %c0_i32 = arith.constant 0 : i32
    %c0_i32_0 = arith.constant 0 : i32
    return %arg1, %arg0, %c0_i32 : i32, i32, i32
  }
  func.func @transform_1(%arg0: i32, %arg1: i32) -> (i32, i32, i32) {
    %c0_i32 = arith.constant 0 : i32
    %c0_i32_0 = arith.constant 0 : i32
    %c0_i32_1 = arith.constant 0 : i32
    %c0_i32_2 = arith.constant 0 : i32
    return %c0_i32, %c0_i32_0, %c0_i32_1 : i32, i32, i32
  }
  func.func @transform_2(%arg0: i32, %arg1: i32) -> (i32, i32, i32) {
    %c0_i32 = arith.constant 0 : i32
    %c0_i32_0 = arith.constant 0 : i32
    %c0_i32_1 = arith.constant 0 : i32
    %c0_i32_2 = arith.constant 0 : i32
    return %c0_i32, %c0_i32_0, %c0_i32_1 : i32, i32, i32
  }
  func.func @transform_3(%arg0: i32, %arg1: i32) -> (i32, i32, i32, i32) {
    %c0_i32 = arith.constant 0 : i32
    %c0_i32_0 = arith.constant 0 : i32
    %c0_i32_1 = arith.constant 0 : i32
    return %arg1, %c0_i32, %arg0, %c0_i32_0 : i32, i32, i32, i32
  }
}

</mosaic_0001>

<bundles_post_ra>
// kernel: recurrent_highway.3
= control target key start
LH: loop header
LB: loop body
LE: loop exit
PB: predicated region body
PF: predicated region fallthrough
CT: control target
= control target key end

     0   :  { %vm91_vm0 = vcmask 261120   ;;  %vm165_vm1 = vcmask 523264   ;;  %s376_s1 = inlined_call_operand.vmem [shape: bf16[32,64], index: 1, kind: input, shape index: {}]   ;;  %s377_s0 = inlined_call_operand.vmem [shape: bf16[128,32], index: 0, kind: input, shape index: {}]   ;;  %s378_s2 = inlined_call_operand.vmem [shape: f32[1,64], index: 2, kind: input, shape index: {}]   ;;  %s379_s3 = inlined_call_operand.vmem [shape: f32[128,64], index: 3, kind: output, shape index: {}]  }
   0x1   :  { %v243_v0 = vld [vmem:[%s376_s1 + $0x8] sm:$0xff]  ;;  %v242_v1 = vld [vmem:[%s376_s1] sm:$0xff]  ;;  %v236_v3 = vld [vmem:[%s377_s0 + $0x10] sm:$0xff] }
   0x2   :  { %122 = vmatpush.bf16.msra.mxu0 %v243_v0  ;;  %244 = vmatpush.bf16.msra.mxu1 %v243_v0  ;;  %v234_v2 = vld [vmem:[%s377_s0] sm:$0xff]  ;;  %v240_v5 = vld [vmem:[%s377_s0 + $0x30] sm:$0xff]  ;;  %v235_v6 = vld [vmem:[%s377_s0 + $0x8] sm:$0xff] }
   0x3   :  { %245 = vmatpush.bf16.msra.mxu2 %v243_v0  ;;  %246 = vmatpush.bf16.msra.mxu3 %v243_v0  ;;  %v238_v4 = vld [vmem:[%s377_s0 + $0x20] sm:$0xff]  ;;  %v237_v7 = vld [vmem:[%s377_s0 + $0x18] sm:$0xff]  ;;  %v239_v8 = vld [vmem:[%s377_s0 + $0x28] sm:$0xff] }
   0x4   :  { %v241_v9 = vld [vmem:[%s377_s0 + $0x38] sm:$0xff]  ;;  %v250_v10 = vld [vmem:[%s378_s2] ss:$0 sm:$0xff] }
   0x6   :  { %123 = vmatpush.bf16.msra.mxu0 %v242_v1  ;;  %247 = vmatpush.bf16.msra.mxu1 %v242_v1 }
   0x7   :  { %248 = vmatpush.bf16.msra.mxu2 %v242_v1  ;;  %249 = vmatpush.bf16.msra.mxu3 %v242_v1 }
   0x9   :  { %226 = vmatmul.msk.bf16.vlgmr.msra.gmra.mxu0 %vm91_vm0, %v234_v2  ;;  %228 = vmatmul.msk.bf16.vlgmr.msra.gmra.mxu1 %vm91_vm0, %v236_v3 }
   0xa   :  { %230 = vmatmul.msk.bf16.vlgmr.msra.gmra.mxu2 %vm91_vm0, %v238_v4  ;;  %232 = vmatmul.msk.bf16.vlgmr.msra.gmra.mxu3 %vm91_vm0, %v240_v5 }
  0x19   :  { %227 = vmatmul.msk.bf16.gmra.mxu0 %vm91_vm0, %v235_v6  ;;  %229 = vmatmul.msk.bf16.gmra.mxu1 %vm91_vm0, %v237_v7 }
  0x1a   :  { %231 = vmatmul.msk.bf16.gmra.mxu2 %vm91_vm0, %v239_v8  ;;  %233 = vmatmul.msk.bf16.gmra.mxu3 %vm91_vm0, %v241_v9 }
  0x86   :  { %v125_v11 = vpop.f32.mrf.mxu0  ;;  %v135_v12 = vpop.f32.mrf.mxu1 }
  0x87   :  { %v126_v13 = vadd.f32 %v250_v10, %v125_v11  ;;  %v136_v14 = vadd.f32 %v250_v10, %v135_v12 }
  0x89   :  { %166 = vst.msk [vmem:[%s379_s3] sm:$0xff] %vm165_vm1, %v126_v13 }
  0x8a   :  { %170 = vst.msk [vmem:[%s379_s3 + $0x20] sm:$0xff] %vm165_vm1, %v136_v14 }
  0x8d   :  { %v145_v15 = vpop.f32.mrf.mxu2  ;;  %v155_v16 = vpop.f32.mrf.mxu3 }
  0x8e   :  { %v146_v17 = vadd.f32 %v250_v10, %v145_v15  ;;  %v156_v18 = vadd.f32 %v250_v10, %v155_v16  ;;  %v127_v19 = vpop.f32.mrf.mxu0  ;;  %v137_v20 = vpop.f32.mrf.mxu1 }
  0x8f   :  { %v128_v21 = vadd.f32 %v250_v10, %v127_v19  ;;  %v138_v22 = vadd.f32 %v250_v10, %v137_v20 }
  0x90   :  { %174 = vst.msk [vmem:[%s379_s3 + $0x40] sm:$0xff] %vm165_vm1, %v146_v17 }
  0x91   :  { %178 = vst.msk [vmem:[%s379_s3 + $0x60] sm:$0xff] %vm165_vm1, %v156_v18 }
  0x92   :  { %167 = vst.msk [vmem:[%s379_s3 + $0x8] sm:$0xff] %vm165_vm1, %v128_v21 }
  0x93   :  { %171 = vst.msk [vmem:[%s379_s3 + $0x28] sm:$0xff] %vm165_vm1, %v138_v22 }
  0x95   :  { %v147_v23 = vpop.f32.mrf.mxu2  ;;  %v157_v24 = vpop.f32.mrf.mxu3 }
  0x96   :  { %v148_v25 = vadd.f32 %v250_v10, %v147_v23  ;;  %v158_v26 = vadd.f32 %v250_v10, %v157_v24  ;;  %v130_v27 = vpop.f32.mrf.mxu0  ;;  %v140_v28 = vpop.f32.mrf.mxu1 }
  0x97   :  { %v131_v29 = vadd.f32 %v250_v10, %v130_v27  ;;  %v141_v30 = vadd.f32 %v250_v10, %v140_v28 }
  0x98   :  { %175 = vst.msk [vmem:[%s379_s3 + $0x48] sm:$0xff] %vm165_vm1, %v148_v25 }
  0x99   :  { %179 = vst.msk [vmem:[%s379_s3 + $0x68] sm:$0xff] %vm165_vm1, %v158_v26 }
  0x9a   :  { %168 = vst.msk [vmem:[%s379_s3 + $0x10] sm:$0xff] %vm165_vm1, %v131_v29 }
  0x9b   :  { %172 = vst.msk [vmem:[%s379_s3 + $0x30] sm:$0xff] %vm165_vm1, %v141_v30 }
  0x9d   :  { %v150_v31 = vpop.f32.mrf.mxu2  ;;  %v160_v32 = vpop.f32.mrf.mxu3 }
  0x9e   :  { %v151_v33 = vadd.f32 %v250_v10, %v150_v31  ;;  %v161_v34 = vadd.f32 %v250_v10, %v160_v32  ;;  %v132_v35 = vpop.f32.mrf.mxu0  ;;  %v142_v36 = vpop.f32.mrf.mxu1 }
  0x9f   :  { %v133_v37 = vadd.f32 %v250_v10, %v132_v35  ;;  %v143_v38 = vadd.f32 %v250_v10, %v142_v36 }
  0xa0   :  { %176 = vst.msk [vmem:[%s379_s3 + $0x50] sm:$0xff] %vm165_vm1, %v151_v33 }
  0xa1   :  { %180 = vst.msk [vmem:[%s379_s3 + $0x70] sm:$0xff] %vm165_vm1, %v161_v34 }
  0xa2   :  { %169 = vst.msk [vmem:[%s379_s3 + $0x18] sm:$0xff] %vm165_vm1, %v133_v37 }
  0xa3   :  { %173 = vst.msk [vmem:[%s379_s3 + $0x38] sm:$0xff] %vm165_vm1, %v143_v38 }
  0xa5   :  { %v152_v39 = vpop.f32.mrf.mxu2  ;;  %v162_v40 = vpop.f32.mrf.mxu3 }
  0xa6   :  { %v153_v41 = vadd.f32 %v250_v10, %v152_v39  ;;  %v163_v42 = vadd.f32 %v250_v10, %v162_v40 }
  0xa8   :  { %177 = vst.msk [vmem:[%s379_s3 + $0x58] sm:$0xff] %vm165_vm1, %v153_v41 }
  0xa9   :  { %181 = vst.msk [vmem:[%s379_s3 + $0x78] sm:$0xff] %vm165_vm1, %v163_v42 }

// kernel: recurrent_highway.2
= control target key start
LH: loop header
LB: loop body
LE: loop exit
PB: predicated region body
PF: predicated region fallthrough
CT: control target
= control target key end

     0   :  { %s1190_s12 = smov 0   ;;  %s1192_s13 = smov 0   ;;  %s1400_s0 = inlined_call_operand.vmem [shape: f32[8,8,96], index: 0, kind: input, shape index: {}]   ;;  %s1401_s1 = inlined_call_operand.vmem [shape: bf16[3,32,96], index: 1, kind: input, shape index: {}]   ;;  %s1402_s2 = inlined_call_operand.vmem [shape: f32[3,1,96], index: 2, kind: input, shape index: {}]   ;;  %s1403_s3 = inlined_call_operand.vmem [shape: bf16[8,3,8,32], index: 3, kind: output, shape index: {}]  }
   0x1   :  { %s1194_s14 = smov 0  }
   0x2 LB: > { %s22_s15 = sadd.s32 1, %s1161_s13  ;;  %p909_p0 = scmp.ge.s32.totalorder %s1165_s14, 1  ;;  %s1165_s14 = sphi %s1194_s14, %s13_s14   ;;  %s1161_s13 = sphi %s1192_s13, %s1405_s13   ;;  %s1157_s12 = sphi %s1190_s12, %s1404_s12  }
   0x3   : > { %p23_p1 = scmp.ge.s32.totalorder %s22_s15, 2  ;;  %p157_p2 = scmp.lt.s32.totalorder %s1165_s14, 3 }
   0x5   : > { %s1407_s15 = smov (%p23_p1, %s22_s15), 0  ;;  %p158_p3 = pnand %p909_p0, %p157_p2 }
   0x6   : > { %s910_s16 = sshll.u32 (!%p158_p3), %s1157_s12, 2  ;;  %p914_p5 = scmp.ne.s32.totalorder (!%p158_p3), %s1157_s12, 0 }
   0x7   : > { %161 = sbr.rel (%p158_p3) target bundleno = 3061 (0xbf5), region = 32  ;;  %p189_p4 = scmp.lt.s32.totalorder (!%p158_p3), %s910_s16, 7 }
   0xc   : > { %s1409_s16 = smov (!%p189_p4, %s910_s16), 7  ;;  %211 = sbr.rel (%p914_p5) target bundleno = 19 (0x13), region = 36 }
   0xd   : > { %s911_s17 = sshll.u32 %s1409_s16, 3  ;;  %s1103_s18 = smul.u32 12, %s1409_s16 }
   0xe   : > { %s1211_s21 = scalar_lea.vmem %s1400_s0, %s911_s17 }
   0xf   : > { %s1216_s24 = scalar_lea.vmem %s1403_s3, %s1103_s18 }
  0x11   : > { %vm212_vm0 = vcmask 261120   ;;  %v1167_v0 = vmov 0.0  }
  0x12   : > { %213 = vst.msk [vmem:[#allocation2] sm:$0xff] %vm212_vm0, %v1167_v0 }
  0x13 PF: > { %v1080_v1 = vld [vmem:[%s1401_s1 + $0x8] sm:$0xff]  ;;  %v1079_v2 = vld [vmem:[%s1401_s1] sm:$0xff]  ;;  %vm237_vm1 = vcmask 261120   ;;  %s1168_s4 = smov 96   ;;  %s1169_s5 = smov 64   ;;  %v1082_v11 = vld [vmem:[%s1401_s1 + $0x18] sm:$0xff] }
  0x14   : > { %247 = vmatpush.bf16.msra.mxu0 %v1080_v1  ;;  %v1131_v5 = vld [vmem:[%s1402_s2] ss:$0 sm:$0xff]  ;;  %299 = vmatpush.bf16.msra.mxu1 %v1082_v11  ;;  %v1081_v12 = vld [vmem:[%s1401_s1 + $0x10] sm:$0xff]  ;;  %vm266_vm2 = vcmask 257024   ;;  %v1132_v19 = vld [vmem:[%s1402_s2 + $0x1] ss:$0 sm:$0xff] }
  0x15   : > { %v215_v6 = vld [vmem:[%s1211_s21] sm:$0xff]  ;;  %v1084_v23 = vld [vmem:[%s1401_s1 + $0x28] sm:$0xff]  ;;  %v1088_v43 = vld [vmem:[%s1401_s1 + $0x18] sm:$0xff] }
  0x16   : > { %350 = vmatpush.bf16.msra.mxu2 %v1084_v23  ;;  %v1083_v24 = vld [vmem:[%s1401_s1 + $0x20] sm:$0xff]  ;;  %v1086_v35 = vld [vmem:[%s1401_s1 + $0x8] sm:$0xff]  ;;  %v1087_v44 = vld [vmem:[%s1401_s1 + $0x10] sm:$0xff] }
  0x17   : > { %v1133_v31 = vld [vmem:[%s1402_s2 + $0x2] ss:$0 sm:$0xff]  ;;  %401 = vmatpush.bf16.msra.mxu3 %v1086_v35  ;;  %v1134_v45 = vld [vmem:[%s1402_s2] ss:$0 sm:$0xff]  ;;  %v954_v46 = vld [vmem:[%s1211_s21 + $0x8] sm:$0xff] }
  0x18   : > { %248 = vmatpush.bf16.msra.mxu0 %v1079_v2  ;;  %300 = vmatpush.bf16.msra.mxu1 %v1081_v12  ;;  %v1085_v36 = vld [vmem:[%s1401_s1] sm:$0xff]  ;;  %v1090_v61 = vld [vmem:[%s1401_s1 + $0x28] sm:$0xff] }
  0x19   : > { %v214_v3 = vld [vmem:[#allocation2] sm:$0xff]  ;;  %v1096_v35 = vld [vmem:[%s1401_s1 + $0x28] sm:$0xff] }
  0x1a   : > { %v216_v4 = vpack.c.bf16 %v214_v3, %v214_v3  ;;  %351 = vmatpush.bf16.msra.mxu2 %v1083_v24  ;;  %v1135_v57 = vld [vmem:[%s1402_s2 + $0x1] ss:$0 sm:$0xff] }
  0x1b   : > { %402 = vmatpush.bf16.msra.mxu3 %v1085_v36  ;;  %v1089_v62 = vld [vmem:[%s1401_s1 + $0x20] sm:$0xff] }
  0x1c   : > { %923 = vmatmul.msk.bf16.vlgmr.msra.gmra.mxu0 %vm237_vm1, %v216_v4  ;;  %500 = vmatpush.bf16.msrb.mxu1 %v1090_v61  ;;  %v1095_v36 = vld [vmem:[%s1401_s1 + $0x20] sm:$0xff] }
  0x1d   : > { %451 = vmatpush.bf16.msrb.mxu0 %v1088_v43  ;;  %v1139_v43 = vld [vmem:[%s1402_s2 + $0x2] ss:$0 sm:$0xff] }
  0x20   : > { %501 = vmatpush.bf16.msrb.mxu1 %v1089_v62 }
  0x21   : > { %452 = vmatpush.bf16.msrb.mxu0 %v1087_v44 }
  0x25   : > { %650 = vmatpush.bf16.msra.mxu0 %v1096_v35 }
  0x29   : > { %651 = vmatpush.bf16.msra.mxu0 %v1095_v36 }
  0x99   : > { %v250_v7 = vpop.f32.mrf.mxu0 }
  0x9a   : > { %v251_v8 = vadd.f32 %v1131_v5, %v250_v7  ;;  %v1136_v5 = vld [vmem:[%s1402_s2 + $0x2] ss:$0 sm:$0xff] }
  0x9c   : > { %v254_v9 = vadd.f32 %v251_v8, %v215_v6 }
  0x9e   : > { %256 = vrot.lane.b32.xlu0 %v254_v9, %s1168_s4 }
  0xa1   : > { %v252_v10 = vpop.f32.mrf.mxu0 }
  0xa2   : > { %v1091_v10 = vld [vmem:[%s1401_s1] sm:$0xff] }
  0xa6   : > { %260 = vrot.lane.b32.xlu0 %v254_v9, %s1169_s5 }
 0x110   : > { %v257_v13 = vpop.permute.xlu0 %256 }
 0x111   : > { %v259_v15 = vmul.f32 %v257_v13, %v254_v9  ;;  %v1092_v9 = vld [vmem:[%s1401_s1 + $0x8] sm:$0xff] }
 0x112   : > { %551 = vmatpush.bf16.msrb.mxu2 %v1092_v9  ;;  %v1102_v9 = vld [vmem:[%s1401_s1 + $0x28] sm:$0xff] }
 0x116   : > { %552 = vmatpush.bf16.msrb.mxu2 %v1091_v10  ;;  %v1101_v10 = vld [vmem:[%s1401_s1 + $0x20] sm:$0xff] }
 0x118   : > { %v261_v14 = vpop.permute.xlu0 %260 }
 0x119   : > { %v263_v16 = vmul.f32 %v261_v14, %v214_v3 }
 0x11b   : > { %v264_v17 = vadd.f32 %v263_v16, %v259_v15 }
 0x11d   : > { %v265_v18 = vpack.c.bf16 %v264_v17, %v264_v17 }
 0x11f   : > { %267 = vst.msk [vmem:[%s1216_s24] sm:$0xf] %vm266_vm2, %v265_v18  ;;  %937 = vmatmul.msk.bf16.vlgmr.msra.gmra.mxu1 %vm237_vm1, %v265_v18  ;;  %v1093_v18 = vld [vmem:[%s1401_s1 + $0x10] sm:$0xff] }
 0x19c   : > { %v302_v20 = vpop.f32.mrf.mxu1 }
 0x19d   : > { %v303_v21 = vadd.f32 %v1132_v19, %v302_v20  ;;  %v1137_v19 = vld [vmem:[%s1402_s2] ss:$0 sm:$0xff]  ;;  %v995_v20 = vld [vmem:[%s1211_s21 + $0x10] sm:$0xff] }
 0x19f   : > { %307 = vrot.lane.b32.xlu1 %v303_v21, %s1168_s4 }
 0x1a4   : > { %v304_v22 = vpop.f32.mrf.mxu1 }
 0x1a7   : > { %311 = vrot.lane.b32.xlu1 %v303_v21, %s1169_s5 }
 0x211   : > { %v308_v25 = vpop.permute.xlu1 %307 }
 0x212   : > { %v310_v27 = vmul.f32 %v308_v25, %v303_v21 }
 0x219   : > { %v312_v26 = vpop.permute.xlu1 %311 }
 0x21a   : > { %v314_v28 = vmul.f32 %v312_v26, %v264_v17  ;;  %v1094_v17 = vld [vmem:[%s1401_s1 + $0x18] sm:$0xff] }
 0x21b   : > { %601 = vmatpush.bf16.msrb.mxu3 %v1094_v17  ;;  %v1142_v17 = vld [vmem:[%s1402_s2 + $0x2] ss:$0 sm:$0xff] }
 0x21c   : > { %v315_v29 = vadd.f32 %v314_v28, %v310_v27 }
 0x21e   : > { %v316_v30 = vpack.c.bf16 %v315_v29, %v315_v29 }
 0x21f   : > { %602 = vmatpush.bf16.msrb.mxu3 %v1093_v18 }
 0x220   : > { %938 = vst.msk [vmem:[%s1216_s24 + $0x4] sm:$0xf] %vm266_vm2, %v316_v30  ;;  %952 = vmatmul.msk.bf16.vlgmr.msra.gmra.mxu2 %vm237_vm1, %v316_v30 }
 0x2a3   : > { %v353_v32 = vpop.f32.mrf.mxu2 }
 0x2a4   : > { %v354_v33 = vadd.f32 %v1133_v31, %v353_v32  ;;  %v1138_v31 = vld [vmem:[%s1402_s2 + $0x1] ss:$0 sm:$0xff] }
 0x2a6   : > { %358 = vrot.lane.b32.xlu2 %v354_v33, %s1168_s4 }
 0x2ab   : > { %v355_v34 = vpop.f32.mrf.mxu2 }
 0x2ae   : > { %362 = vrot.lane.b32.xlu2 %v354_v33, %s1169_s5 }
 0x300   : > { %v359_v37 = vpop.permute.xlu2 %358 }
 0x301   : > { %v361_v39 = vmul.f32 %v359_v37, %v354_v33 }
 0x308   : > { %v363_v38 = vpop.permute.xlu2 %362 }
 0x309   : > { %v365_v40 = vmul.f32 %v363_v38, %v315_v29 }
 0x30b   : > { %v366_v41 = vadd.f32 %v365_v40, %v361_v39 }
 0x30d   : > { %v367_v42 = vpack.c.bf16 %v366_v41, %v366_v41 }
 0x30f   : > { %953 = vst.msk [vmem:[%s1216_s24 + $0x8] sm:$0xf] %vm266_vm2, %v367_v42  ;;  %963 = vmatmul.msk.bf16.vlgmr.msra.gmra.mxu3 %vm237_vm1, %v367_v42 }
 0x310   : > { %800 = vmatpush.bf16.msra.mxu3 %v1102_v9 }
 0x314   : > { %801 = vmatpush.bf16.msra.mxu3 %v1101_v10 }
 0x392   : > { %v404_v47 = vpop.f32.mrf.mxu3 }
 0x393   : > { %v405_v48 = vadd.f32 %v1134_v45, %v404_v47  ;;  %v1098_v47 = vld [vmem:[%s1401_s1 + $0x8] sm:$0xff] }
 0x394   : > { %701 = vmatpush.bf16.msra.mxu1 %v1098_v47 }
 0x395   : > { %v408_v49 = vadd.f32 %v954_v46, %v405_v48  ;;  %v1097_v48 = vld [vmem:[%s1401_s1] sm:$0xff] }
 0x397   : > { %414 = vrot.lane.b32.xlu1 %v408_v49, %s1169_s5  ;;  %410 = vrot.lane.b32.xlu0 %v408_v49, %s1168_s4 }
 0x398   : > { %702 = vmatpush.bf16.msra.mxu1 %v1097_v48 }
 0x39a   : > { %v406_v50 = vpop.f32.mrf.mxu3 }
 0x409   : > { %v415_v51 = vpop.permute.xlu1 %414  ;;  %v411_v52 = vpop.permute.xlu0 %410 }
 0x40a   : > { %v417_v53 = vmul.f32 %v415_v51, %v366_v41  ;;  %v413_v54 = vmul.f32 %v411_v52, %v408_v49 }
 0x40c   : > { %v418_v55 = vadd.f32 %v417_v53, %v413_v54 }
 0x40e   : > { %v419_v56 = vpack.c.bf16 %v418_v55, %v418_v55 }
 0x410   : > { %964 = vst.msk [vmem:[%s1216_s24 + $0xc] sm:$0xf] %vm266_vm2, %v419_v56  ;;  %978 = vmatmul.msk.bf16.vlgmr.msrb.gmra.mxu0 %vm237_vm1, %v419_v56  ;;  %v1099_v56 = vld [vmem:[%s1401_s1 + $0x10] sm:$0xff] }
 0x48d   : > { %v454_v58 = vpop.f32.mrf.mxu0 }
 0x48e   : > { %v455_v59 = vadd.f32 %v1135_v57, %v454_v58  ;;  %v1140_v57 = vld [vmem:[%s1402_s2] ss:$0 sm:$0xff]  ;;  %v1036_v58 = vld [vmem:[%s1211_s21 + $0x18] sm:$0xff] }
 0x490   : > { %463 = vrot.lane.b32.xlu0 %v455_v59, %s1169_s5  ;;  %459 = vrot.lane.b32.xlu2 %v455_v59, %s1168_s4 }
 0x495   : > { %v456_v60 = vpop.f32.mrf.mxu0 }
 0x4ea   : > { %v460_v63 = vpop.permute.xlu2 %459 }
 0x4eb   : > { %v462_v1 = vmul.f32 %v460_v63, %v455_v59 }
 0x502   : > { %v464_v0 = vpop.permute.xlu0 %463 }
 0x503   : > { %v466_v2 = vmul.f32 %v464_v0, %v418_v55  ;;  %v1100_v55 = vld [vmem:[%s1401_s1 + $0x18] sm:$0xff] }
 0x504   : > { %751 = vmatpush.bf16.msra.mxu2 %v1100_v55 }
 0x505   : > { %v467_v3 = vadd.f32 %v466_v2, %v462_v1 }
 0x507   : > { %v468_v4 = vpack.c.bf16 %v467_v3, %v467_v3 }
 0x508   : > { %752 = vmatpush.bf16.msra.mxu2 %v1099_v56 }
 0x509   : > { %979 = vst.msk [vmem:[%s1216_s24 + $0x10] sm:$0xf] %vm266_vm2, %v468_v4  ;;  %993 = vmatmul.msk.bf16.vlgmr.msrb.gmra.mxu1 %vm237_vm1, %v468_v4 }
 0x586   : > { %v503_v6 = vpop.f32.mrf.mxu1 }
 0x587   : > { %v504_v7 = vadd.f32 %v1136_v5, %v503_v6  ;;  %v1141_v5 = vld [vmem:[%s1402_s2 + $0x1] ss:$0 sm:$0xff] }
 0x589   : > { %512 = vrot.lane.b32.xlu2 %v504_v7, %s1169_s5  ;;  %508 = vrot.lane.b32.xlu1 %v504_v7, %s1168_s4 }
 0x58e   : > { %v505_v8 = vpop.f32.mrf.mxu1 }
 0x5e3   : > { %v513_v11 = vpop.permute.xlu2 %512 }
 0x5e4   : > { %v515_v13 = vmul.f32 %v513_v11, %v467_v3 }
 0x5fb   : > { %v509_v12 = vpop.permute.xlu1 %508 }
 0x5fc   : > { %v511_v14 = vmul.f32 %v509_v12, %v504_v7 }
 0x5fe   : > { %v516_v15 = vadd.f32 %v515_v13, %v511_v14 }
 0x600   : > { %v517_v16 = vpack.c.bf16 %v516_v15, %v516_v15 }
 0x602   : > { %994 = vst.msk [vmem:[%s1216_s24 + $0x14] sm:$0xf] %vm266_vm2, %v517_v16  ;;  %1004 = vmatmul.msk.bf16.vlgmr.msrb.gmra.mxu2 %vm237_vm1, %v517_v16 }
 0x685   : > { %v554_v21 = vpop.f32.mrf.mxu2 }
 0x686   : > { %v555_v22 = vadd.f32 %v1137_v19, %v554_v21 }
 0x688   : > { %v558_v23 = vadd.f32 %v995_v20, %v555_v22 }
 0x68a   : > { %564 = vrot.lane.b32.xlu1 %v558_v23, %s1169_s5  ;;  %560 = vrot.lane.b32.xlu0 %v558_v23, %s1168_s4 }
 0x68d   : > { %v556_v24 = vpop.f32.mrf.mxu2 }
 0x6fc   : > { %v565_v25 = vpop.permute.xlu1 %564  ;;  %v561_v26 = vpop.permute.xlu0 %560 }
 0x6fd   : > { %v567_v27 = vmul.f32 %v565_v25, %v516_v15  ;;  %v563_v28 = vmul.f32 %v561_v26, %v558_v23 }
 0x6ff   : > { %v568_v29 = vadd.f32 %v567_v27, %v563_v28 }
 0x701   : > { %v569_v30 = vpack.c.bf16 %v568_v29, %v568_v29 }
 0x703   : > { %1005 = vst.msk [vmem:[%s1216_s24 + $0x18] sm:$0xf] %vm266_vm2, %v569_v30  ;;  %1019 = vmatmul.msk.bf16.vlgmr.msrb.gmra.mxu3 %vm237_vm1, %v569_v30 }
 0x786   : > { %v604_v32 = vpop.f32.mrf.mxu3 }
 0x787   : > { %v605_v33 = vadd.f32 %v1138_v31, %v604_v32 }
 0x789   : > { %613 = vrot.lane.b32.xlu0 %v605_v33, %s1169_s5  ;;  %609 = vrot.lane.b32.xlu2 %v605_v33, %s1168_s4 }
 0x78e   : > { %v606_v34 = vpop.f32.mrf.mxu3 }
 0x7e3   : > { %v610_v37 = vpop.permute.xlu2 %609 }
 0x7e4   : > { %v612_v39 = vmul.f32 %v610_v37, %v605_v33 }
 0x7fb   : > { %v614_v38 = vpop.permute.xlu0 %613 }
 0x7fc   : > { %v616_v40 = vmul.f32 %v614_v38, %v568_v29 }
 0x7fe   : > { %v617_v41 = vadd.f32 %v616_v40, %v612_v39 }
 0x800   : > { %v618_v42 = vpack.c.bf16 %v617_v41, %v617_v41 }
 0x802   : > { %1020 = vst.msk [vmem:[%s1216_s24 + $0x1c] sm:$0xf] %vm266_vm2, %v618_v42  ;;  %1034 = vmatmul.msk.bf16.vlgmr.msra.gmra.mxu0 %vm237_vm1, %v618_v42 }
 0x87f   : > { %v653_v44 = vpop.f32.mrf.mxu0 }
 0x880   : > { %v654_v45 = vadd.f32 %v1139_v43, %v653_v44 }
 0x882   : > { %662 = vrot.lane.b32.xlu2 %v654_v45, %s1169_s5  ;;  %658 = vrot.lane.b32.xlu1 %v654_v45, %s1168_s4 }
 0x887   : > { %v655_v46 = vpop.f32.mrf.mxu0 }
 0x8dc   : > { %v663_v49 = vpop.permute.xlu2 %662 }
 0x8dd   : > { %v665_v51 = vmul.f32 %v663_v49, %v617_v41 }
 0x8f4   : > { %v659_v50 = vpop.permute.xlu1 %658 }
 0x8f5   : > { %v661_v52 = vmul.f32 %v659_v50, %v654_v45 }
 0x8f7   : > { %v666_v53 = vadd.f32 %v665_v51, %v661_v52 }
 0x8f9   : > { %v667_v54 = vpack.c.bf16 %v666_v53, %v666_v53 }
 0x8fb   : > { %1035 = vst.msk [vmem:[%s1216_s24 + $0x20] sm:$0xf] %vm266_vm2, %v667_v54  ;;  %1045 = vmatmul.msk.bf16.vlgmr.msra.gmra.mxu1 %vm237_vm1, %v667_v54 }
 0x978   : > { %v704_v59 = vpop.f32.mrf.mxu1 }
 0x979   : > { %v705_v60 = vadd.f32 %v1140_v57, %v704_v59 }
 0x97b   : > { %v708_v61 = vadd.f32 %v1036_v58, %v705_v60 }
 0x97d   : > { %714 = vrot.lane.b32.xlu1 %v708_v61, %s1169_s5  ;;  %710 = vrot.lane.b32.xlu0 %v708_v61, %s1168_s4 }
 0x980   : > { %v706_v62 = vpop.f32.mrf.mxu1 }
 0x9ef   : > { %v715_v63 = vpop.permute.xlu1 %714  ;;  %v711_v0 = vpop.permute.xlu0 %710 }
 0x9f0   : > { %v717_v1 = vmul.f32 %v715_v63, %v666_v53  ;;  %v713_v2 = vmul.f32 %v711_v0, %v708_v61 }
 0x9f2   : > { %v718_v3 = vadd.f32 %v717_v1, %v713_v2 }
 0x9f4   : > { %v719_v4 = vpack.c.bf16 %v718_v3, %v718_v3 }
 0x9f6   : > { %1046 = vst.msk [vmem:[%s1216_s24 + $0x24] sm:$0xf] %vm266_vm2, %v719_v4  ;;  %1060 = vmatmul.msk.bf16.vlgmr.msra.gmra.mxu2 %vm237_vm1, %v719_v4 }
 0xa79   : > { %v754_v6 = vpop.f32.mrf.mxu2 }
 0xa7a   : > { %v755_v7 = vadd.f32 %v1141_v5, %v754_v6 }
 0xa7c   : > { %763 = vrot.lane.b32.xlu0 %v755_v7, %s1169_s5  ;;  %759 = vrot.lane.b32.xlu2 %v755_v7, %s1168_s4 }
 0xa81   : > { %v756_v8 = vpop.f32.mrf.mxu2 }
 0xad6   : > { %v760_v11 = vpop.permute.xlu2 %759 }
 0xad7   : > { %v762_v13 = vmul.f32 %v760_v11, %v755_v7 }
 0xaee   : > { %v764_v12 = vpop.permute.xlu0 %763 }
 0xaef   : > { %v766_v14 = vmul.f32 %v764_v12, %v718_v3 }
 0xaf1   : > { %v767_v15 = vadd.f32 %v766_v14, %v762_v13 }
 0xaf3   : > { %v768_v16 = vpack.c.bf16 %v767_v15, %v767_v15 }
 0xaf5   : > { %1061 = vst.msk [vmem:[%s1216_s24 + $0x28] sm:$0xf] %vm266_vm2, %v768_v16  ;;  %1075 = vmatmul.msk.bf16.vlgmr.msra.gmra.mxu3 %vm237_vm1, %v768_v16 }
 0xb78   : > { %v803_v18 = vpop.f32.mrf.mxu3 }
 0xb79   : > { %v804_v19 = vadd.f32 %v1142_v17, %v803_v18 }
 0xb7b   : > { %812 = vrot.lane.b32.xlu2 %v804_v19, %s1169_s5  ;;  %808 = vrot.lane.b32.xlu1 %v804_v19, %s1168_s4 }
 0xb80   : > { %v805_v20 = vpop.f32.mrf.mxu3 }
 0xbd5   : > { %v813_v21 = vpop.permute.xlu2 %812 }
 0xbd6   : > { %v815_v23 = vmul.f32 %v813_v21, %v767_v15 }
 0xbed   : > { %v809_v22 = vpop.permute.xlu1 %808 }
 0xbee   : > { %v811_v24 = vmul.f32 %v809_v22, %v804_v19 }
 0xbf0   : > { %v816_v25 = vadd.f32 %v815_v23, %v811_v24 }
 0xbf2   : > { %v817_v26 = vpack.c.bf16 %v816_v25, %v816_v25  ;;  %820 = vst.msk [vmem:[#allocation2] sm:$0xff] %vm237_vm1, %v816_v25 }
 0xbf4   : > { %1076 = vst.msk [vmem:[%s1216_s24 + $0x2c] sm:$0xf] %vm266_vm2, %v817_v26 }
 0xbf5 PF: > { %s13_s14 = sadd.s32 1, %s1165_s14   ;;  %s1404_s12 = smov %s1161_s13 }
 0xbf6   : > { %p10_p6 = scmp.ge.s32.totalorder %s13_s14, 4   ;;  %s1405_s13 = smov %s1407_s15 }
 0xbf8   :  { %12 = sbr.rel (!%p10_p6) target bundleno = 2 (0x2), region = 84 }

</bundles_post_ra>
